<compile_context>
chip_gen: v7x
topology: tpu7x:2x2x1
jax: 0.10.0
libtpu: 0.0.40
codegen_flags: <defaults>
</compile_context>

<pallas_src>
import jax
import jax.numpy as jnp
from jax import lax
from jax.experimental import pallas as pl
from jax.experimental.pallas import tpu as pltpu


def _round_up(x, m):
    return ((x + m - 1) // m) * m


def _ginn_distmult_kernel(q_ref, e_ref, o_ref):
    # q_ref: (tb, Dp) bf16 - precomputed h*r block, resident across the entity axis.
    # e_ref: (tn, Dp) bf16 - streamed tile of the entity embedding table.
    # o_ref: (tb, tn)      - sigmoid(DistMult) score tile (lane-dense).
    # NT matmul on the MXU (contract the last dims of both operands, no transpose),
    # accumulating in f32.
    s = lax.dot_general(
        q_ref[...], e_ref[...],
        dimension_numbers=(((1,), (1,)), ((), ())),
        preferred_element_type=jnp.float32)
    # Sigmoid computed in f32 (v5e has no bf16 VPU/EUP); cast only at the store.
    o_ref[...] = jax.nn.sigmoid(s).astype(o_ref.dtype)


class GINNDistMult:
    """GINN.forward with attention='None', score_func='DistMult' (eval mode)."""

    def __init__(self, entity_embed, relation_embed, *,
                 max_tn=16384, max_tb=512,
                 vmem_budget_bytes=28 << 20,
                 out_dtype=jnp.bfloat16):
        self.entity_embed = jnp.asarray(entity_embed, jnp.float32)
        self.relation_embed = jnp.asarray(relation_embed, jnp.float32)
        self.N, self.D = self.entity_embed.shape
        self.Np = _round_up(self.N, 128)
        self.Dp = _round_up(self.D, 128)
        self.max_tn = max_tn
        self.max_tb = max_tb
        self.vmem_budget_bytes = vmem_budget_bytes
        self.out_dtype = out_dtype

        # One-time preprocessing (hoisted out of forward): bf16 cast + zero padding of
        # the entity table.  Streaming bf16 halves the kernel's HBM traffic and hoisting
        # removes the per-call cast/pad passes over the full table.
        e = self.entity_embed.astype(jnp.bfloat16)
        if self.Np != self.N or self.Dp != self.D:
            e = jnp.pad(e, ((0, self.Np - self.N), (0, self.Dp - self.D)))
        self.e_bf16 = jax.block_until_ready(e)

    def _select_tiles(self, B):
        """Pick (Bp, tb, tn) so double-buffered tiles fit the VMEM budget."""
        Bp = _round_up(B, 16)                      # bf16 sublane packing
        tb = min(self.max_tb, Bp)
        out_isz = jnp.dtype(self.out_dtype).itemsize

        def vmem_use(tn):
            return (2 * tn * self.Dp * 2           # entity tile, bf16, double-buffered
                    + 2 * tb * tn * out_isz        # output tile, double-buffered
                    + 2 * tb * self.Dp * 2)        # resident q block, bf16, double-buffered

        tn = self.max_tn
        while tn > 128 and vmem_use(tn) > self.vmem_budget_bytes:
            tn //= 2
        # Keep at least 2 entity blocks so the "parallel" axis can shard across the two
        # TensorCores on v7x (and both keep streaming).
        half = max(128, (self.Np // 2) // 128 * 128)
        tn = max(128, min(tn, half))
        return Bp, tb, tn, vmem_use(tn)

    def __call__(self, data):
        return self.forward(data)

    def forward(self, data):
        data = jnp.asarray(data, jnp.int32)
        B = data.shape[0]

        # Glue: data-dependent embedding gathers + the tiny (B, D) elementwise product
        # stay in plain JAX.  Only q = h*r is shipped to the kernel — one resident bf16
        # block instead of two resident f32 blocks.
        h = self.entity_embed[data[:, 0]]
        r = self.relation_embed[data[:, 1]]
        q = (h * r).astype(jnp.bfloat16)

        Bp, tb, tn, est_vmem = self._select_tiles(B)
        if Bp != B or self.Dp != self.D:
            q = jnp.pad(q, ((0, Bp - B), (0, self.Dp - self.D)))

        nb = pl.cdiv(Bp, tb)
        ne = pl.cdiv(self.Np, tn)
        # Explicit scoped-VMEM limit: estimated use + headroom, capped well under v7x's
        # 64 MiB physical VMEM (v5e/v6e have 128 MiB physical).
        vmem_limit = int(min(48 << 20, max(est_vmem + (6 << 20), 16 << 20)))

        out = pl.pallas_call(
            _ginn_distmult_kernel,
            out_shape=jax.ShapeDtypeStruct((Bp, self.Np), self.out_dtype),
            grid_spec=pltpu.PrefetchScalarGridSpec(
                num_scalar_prefetch=0,
                grid=(nb, ne),                     # entity axis innermost -> q stays resident
                in_specs=[
                    pl.BlockSpec((tb, self.Dp), lambda i, j: (i, 0)),  # q (resident over j)
                    pl.BlockSpec((tn, self.Dp), lambda i, j: (j, 0)),  # entity-table tile
                ],
                out_specs=pl.BlockSpec((tb, tn), lambda i, j: (i, j)),
            ),
            compiler_params=pltpu.CompilerParams(
                dimension_semantics=("parallel", "parallel"),
                vmem_limit_bytes=vmem_limit),
        )(q, self.e_bf16)

        # Slice only when padding was actually applied (avoids an extra HBM round trip
        # when B and N are already aligned; callers can also keep the padded slab).
        if Bp != B or self.Np != self.N:
            out = out[:B, :self.N]
        return out


def xavier_normal(key, shape):
    fan_out, fan_in = shape
    std = (2.0 / (fan_in + fan_out)) ** 0.5
    return std * jax.random.normal(key, shape, dtype=jnp.float32)


if __name__ == "__main__":
    # Small synthetic configuration consistent with GINN.__init__; shapes deliberately
    # NOT multiples of the tile sizes so the padding paths are exercised.
    n_entity, n_relation, dim = 300, 16, 96
    batch = 6

    key = jax.random.PRNGKey(0)
    k_ent, k_rel, k_h, k_r = jax.random.split(key, 4)

    # Deterministic xavier_normal_ init of the two embedding tables.
    entity_embed = xavier_normal(k_ent, (n_entity, dim))
    relation_embed = xavier_normal(k_rel, (n_relation, dim))

    # data[:, 0] = head entity ids, data[:, 1] = relation ids, data[:, 2] = tail ids (unused)
    heads = jax.random.randint(k_h, (batch,), 0, n_entity, dtype=jnp.int32)
    rels = jax.random.randint(k_r, (batch,), 0, n_relation, dtype=jnp.int32)
    tails = jnp.zeros((batch,), dtype=jnp.int32)
    data = jnp.stack([heads, rels, tails], axis=1)

    model = GINNDistMult(entity_embed, relation_embed)
    out = model(data)
    out = jax.block_until_ready(out)

    # Pure-JAX f32 reference of the same forward semantics.
    h_ref = entity_embed[data[:, 0]]
    r_ref = relation_embed[data[:, 1]]
    ref = jax.nn.sigmoid((h_ref * r_ref) @ entity_embed.T)

    assert out.shape == (batch, n_entity)
    out_f32 = out.astype(jnp.float32)
    # bf16-streamed entity table + bf16 q + bf16 score store, f32 MXU accumulation:
    # tolerance is loose but tight enough to catch a wrong matmul or bad padding.
    err = float(jnp.max(jnp.abs(out_f32 - ref)))
    assert jnp.allclose(out_f32, ref, atol=2e-2, rtol=2e-2), err

    print("KERNEL_OK")
</pallas_src>

<mosaic_0001>
module attributes {stable_mosaic.version = 11 : i64} {
  func.func @_ginn_distmult_kernel(%arg0: i32, %arg1: i32, %arg2: memref<16x128xbf16, #tpu.memory_space<vmem>>, %arg3: memref<128x128xbf16, #tpu.memory_space<vmem>>, %arg4: memref<16x128xbf16, #tpu.memory_space<vmem>>) attributes {dimension_semantics = [#tpu.dimension_semantics<parallel>, #tpu.dimension_semantics<parallel>], iteration_bounds = array<i64: 1, 3>, scalar_prefetch = 0 : i64, scratch_operands = 0 : i64, tpu.core_type = #tpu.core_type<tc>, window_params = [{transform_indices = @transform_0, window_bounds = array<i64: 16, 128>}, {transform_indices = @transform_1, window_bounds = array<i64: 128, 128>}, {transform_indices = @transform_2, window_bounds = array<i64: 16, 128>}]} {
    %c0 = arith.constant 0 : index
    %c0_0 = arith.constant 0 : index
    %0 = vector.load %arg2[%c0, %c0_0] : memref<16x128xbf16, #tpu.memory_space<vmem>>, vector<16x128xbf16>
    %c0_1 = arith.constant 0 : index
    %c0_2 = arith.constant 0 : index
    %1 = vector.load %arg3[%c0_1, %c0_2] : memref<128x128xbf16, #tpu.memory_space<vmem>>, vector<128x128xbf16>
    %cst = arith.constant dense<0.000000e+00> : vector<16x128xf32>
    %2 = tpu.matmul %0, %1, %cst {dimension_numbers = #tpu.dot_dimension_numbers<[1], [1], [0], [0], [0, 0, 1, 0], [], []>} : vector<16x128xbf16>, vector<128x128xbf16>, vector<16x128xf32> -> vector<16x128xf32>
    %3 = arith.negf %2 : vector<16x128xf32>
    %4 = math.exp %3 : vector<16x128xf32>
    %cst_3 = arith.constant 1.000000e+00 : f32
    %5 = vector.broadcast %cst_3 : f32 to vector<16x128xf32>
    %6 = arith.addf %5, %4 : vector<16x128xf32>
    %7 = arith.divf %5, %6 : vector<16x128xf32>
    %8 = arith.truncf %7 : vector<16x128xf32> to vector<16x128xbf16>
    %c0_4 = arith.constant 0 : index
    %c0_5 = arith.constant 0 : index
    %9 = vector.load %arg4[%c0_4, %c0_5] : memref<16x128xbf16, #tpu.memory_space<vmem>>, vector<16x128xbf16>
    tpu.vector_store %arg4[%c0_4, %c0_5], %8 {strides = array<i32>} : memref<16x128xbf16, #tpu.memory_space<vmem>>, vector<16x128xbf16>,
    return
  }
  func.func @transform_0(%arg0: i32, %arg1: i32) -> (i32, i32) {
    %c0_i32 = arith.constant 0 : i32
    %c0_i32_0 = arith.constant 0 : i32
    return %arg0, %c0_i32 : i32, i32
  }
  func.func @transform_1(%arg0: i32, %arg1: i32) -> (i32, i32) {
    %c0_i32 = arith.constant 0 : i32
    %c0_i32_0 = arith.constant 0 : i32
    return %arg1, %c0_i32 : i32, i32
  }
  func.func @transform_2(%arg0: i32, %arg1: i32) -> (i32, i32) {
    %c0_i32 = arith.constant 0 : i32
    return %arg0, %arg1 : i32, i32
  }
}

</mosaic_0001>

<bundles_post_ra>
// kernel: tpu_custom_call.1
= control target key start
LH: loop header
LB: loop body
LE: loop exit
PB: predicated region body
PF: predicated region fallthrough
CT: control target
= control target key end

     0   :  { %7 = vsyncpa [#allocation3], 0  ;;  %s1009_s0 = inlined_call_operand.hbm [shape: bf16[16,128], index: 0, kind: input, shape index: {}]   ;;  %s1010_s1 = inlined_call_operand.hbm [shape: bf16[384,128], index: 1, kind: input, shape index: {}]   ;;  %s1011_s2 = inlined_call_operand.hbm [shape: bf16[16,384], index: 2, kind: output, shape index: {}]  }
   0x1   :  { %8 = vsyncpa [#allocation6], 0 }
   0x2   :  { %10 = vsyncpa [#allocation6 + $0x1], 0 }
   0x3   :  { %11 = vsyncpa [#allocation4], 0 }
   0x4   :  { %13 = vsyncpa [#allocation4 + $0x1], 0  ;;  %s785_s9 = smov 0   ;;  %s787_s10 = smov 0  }
   0x5   :  { %s789_s11 = smov 0   ;;  %s791_s12 = smov 0  }
   0x6   :  { %s793_s13 = smov 0   ;;  %s795_s14 = smov 0  }
   0x7 LB: > { %s451_s15 = sadd.s32 4294967295, %s758_s14   ;;  %s452_s16 = sadd.s32 4294967294, %s758_s14   ;;  %s758_s14 = sphi %s795_s14, %s19_s14   ;;  %s754_s13 = sphi %s793_s13, %s1034_s13   ;;  %s750_s12 = sphi %s791_s12, %s1033_s12   ;;  %s746_s11 = sphi %s789_s11, %s1032_s11   ;;  %s742_s10 = sphi %s787_s10, %s1031_s10   ;;  %s738_s9 = sphi %s785_s9, %s1030_s9  }
   0x8   : > { %p77_p0 = scmp.ne.s32.totalorder %s742_s10, %s738_s9  ;;  %p819_p1 = scmp.eq.s32.totalorder %s451_s15, 0 }
   0x9   : > { %p823_p2 = scmp.eq.s32.totalorder %s451_s15, 2  ;;  %p109_p3 = scmp.eq.s32.totalorder %s452_s16, 2 }
   0xa   : > { %s1016_s17 = scalar_select %p819_p1, 1, 0 }
   0xb   : > { %s1017_s18 = scalar_select %p823_p2, 1, 0 }
   0xc   : > { %p829_p4 = por %p819_p1, %p77_p0  ;;  %p453_p5 = scmp.ge.s32.totalorder %s758_s14, 1 }
   0xd   : > { %p834_p6 = por %p109_p3, %p77_p0  ;;  %p116_p7 = scmp.lt.s32.totalorder %s758_s14, 4 }
   0xe   : > { %s1018_s19 = scalar_select %p829_p4, 1, 0 }
   0xf   : > { %s1019_s20 = scalar_select %p834_p6, 1, 0 }
  0x10   : > { %p839_p8 = pnand %p453_p5, %p116_p7  ;;  %s760_s22 = smov [#allocation2]  }
  0x11   : > { %s131_s23 = sshll.u32 %s760_s22, 4  ;;  %s28_s25 = sadd.s32 1, %s754_s13  ;;  %s132_s23 = int_to_ptr.vmem [resolvable:$true] %s131_s23 }
  0x12   : > { %s1020_s21 = scalar_select %p839_p8, 1, 0 }
  0x13   : > { %p525_p9 = pneg %p839_p8  ;;  %s614_s28 = scalar_lea.hbm %s1009_s0, 128 }
  0x14   : > { %p615_p11 = scmp.ne.s32.totalorder %s1009_s0, %s614_s28  ;;  %p621_p3 = scmp.lt.u32.totalorder %s614_s28, %s1009_s0 }
  0x15   : > { %p847_p10 = pnand %p525_p9, %p819_p1 }
  0x17   : > { %p616_p12 = pneg %p847_p10 }
  0x19   : > { %p617_p13 = pnand %p616_p12, %p615_p11 }
  0x1b   : > { %p618_p0 = pneg %p617_p13 }
  0x1d   : > { %p623_p5 = pnand %p621_p3, %p618_p0 }
  0x1f   : > { %626 = shalt.err (!%p623_p5)
}
  0x20   : > { %s627_s5 = scalar_lea.vmem %s132_s23, 128  ;;  %p635_p4 = scmp.lt.s32.totalorder %s132_s23, %s132_s23 }
  0x21   : > { %p628_p7 = scmp.ne.s32.totalorder %s132_s23, %s627_s5  ;;  %p636_p1 = scmp.lt.s32.totalorder %s627_s5, %s627_s5 }
  0x23   : > { %p630_p9 = pnand %p628_p7, %p616_p12  ;;  %p637_p8 = por %p636_p1, %p635_p4 }
  0x25   : > { %p631_p6 = pneg %p630_p9 }
  0x27   : > { %p638_p2 = pnand %p637_p8, %p631_p6 }
  0x29   : > { %641 = shalt.err (!%p638_p2)
}
  0x2a   : > { %s761_s6 = smov 64   ;;  %s762_s7 = smov 4  }
  0x2b   : > { %528 = dma.hbm_to_vmem [thread:$0]  (!%p847_p10), %s1009_s0, 128, %s132_s23, [#allocation3], %s761_s6, %s761_s6, %s762_s7  }
  0x2c   : > { %p29_p1 = scmp.ge.s32.totalorder %s28_s25, 3  ;;  %s64_s16 = sadd.s32 1, %s746_s11 }
  0x2d   : > { %p71_p2 = scmp.ne.s32.totalorder %s746_s11, %s742_s10  ;;  %p72_p4 = scmp.eq.s32.totalorder %s758_s14, 0 }
  0x2e   : > { %s1036_s25 = smov (%p29_p1, %s28_s25), 0  ;;  %p1023_p8 = scmp.ne.s32.totalorder %s1017_s18, 0 }
  0x2f   : > { %p877_p6 = por %p72_p4, %p71_p2  ;;  %s61_s26 = ssub.s32 %s754_s13, %s1036_s25 }
  0x30   : > { %p883_p11 = por %p1023_p8, %p71_p2  ;;  %p538_p12 = scmp.lt.s32.totalorder %s758_s14, 3 }
  0x31   : > { %p62_p10 = scmp.eq.s32.totalorder %s61_s26, 0  ;;  %s145_s23 = sand.u32 1, %s746_s11  }
  0x32   : > { %s456_s27 = sshll.u32 %s145_s23, 6  ;;  %s480_s29 = sshll.u32 %s754_s13, 10 }
  0x33   : > { %s892_s28 = scalar_select %p62_p10, %s746_s11, %s64_s16  }
  0x34   : > { %s898_s4 = scalar_lea.hbm %s1010_s1, %s480_s29  ;;  %s149_s18 = scalar_lea.vmem [#allocation5], %s456_s27 }
  0x35   : > { %s156_s5 = sshll.u32 %s149_s18, 4  ;;  %p904_p13 = pnand %p538_p12, %p877_p6  ;;  %s900_s5 = int_to_ptr.vmem [resolvable:$true] %s156_s5 }
  0x36   : > { %s908_s15 = scalar_lea.sflag [#allocation6], %s145_s23  ;;  %s642_s16 = scalar_lea.hbm %s898_s4, 1024 }
  0x37   : > { %p643_p0 = scmp.ne.s32.totalorder %s898_s4, %s642_s16  ;;  %p644_p3 = pneg %p904_p13 }
  0x38   : > { %s647_s22 = scalar_lea.hbm %s1010_s1, 3072  ;;  %p648_p9 = scmp.lt.u32.totalorder %s898_s4, %s1010_s1 }
  0x39   : > { %p645_p5 = pnand %p644_p3, %p643_p0  ;;  %p649_p1 = scmp.lt.u32.totalorder %s647_s22, %s642_s16 }
  0x3a   : > { %p651_p4 = scmp.lt.u32.totalorder %s642_s16, %s898_s4 }
  0x3b   : > { %p646_p7 = pneg %p645_p5  ;;  %p650_p2 = por %p649_p1, %p648_p9 }
  0x3d   : > { %p652_p6 = por %p651_p4, %p650_p2 }
  0x3f   : > { %p653_p8 = pnand %p652_p6, %p646_p7 }
  0x41   : > { %656 = shalt.err (!%p653_p8)
}
  0x42   : > { %s657_s23 = scalar_lea.vmem %s900_s5, 1024  ;;  %s763_s3 = smov [#allocation5]  }
  0x43   : > { %p658_p12 = scmp.ne.s32.totalorder %s900_s5, %s657_s23  ;;  %s662_s18 = sshll.u32 %s763_s3, 4  ;;  %s663_s18 = int_to_ptr.vmem [resolvable:$false] %s662_s18 }
  0x44   : > { %s664_s26 = scalar_lea.vmem %s663_s18, 2048  ;;  %p665_p5 = scmp.lt.s32.totalorder %s900_s5, %s663_s18 }
  0x45   : > { %p660_p10 = pnand %p658_p12, %p644_p3  ;;  %p666_p9 = scmp.lt.s32.totalorder %s664_s26, %s657_s23 }
  0x47   : > { %p661_p0 = pneg %p660_p10  ;;  %p667_p1 = por %p666_p9, %p665_p5 }
  0x49   : > { %p668_p2 = pnand %p667_p1, %p661_p0 }
  0x4b   : > { %671 = shalt.err (!%p668_p2)
}
  0x4c   : > { %532 = dma.hbm_to_vmem [thread:$0]  (!%p904_p13), %s898_s4, 1024, %s900_s5, %s908_s15, %s761_s6, %s761_s6, %s762_s7  }
  0x4d   : > { %p1026_p3 = scmp.ne.s32.totalorder %s1020_s21, 0 }
  0x4e   : > { %p1027_p7 = scmp.ne.s32.totalorder (!%p1026_p3), %s1016_s17, 0 }
  0x4f   : > { %168 = sbr.rel (%p1026_p3) target bundleno = 414 (0x19e), region = 28 }
  0x56   : > { %725 = dma.done.wait (%p1027_p7), [#allocation3], 128  }
  0x57   : > { %727 = vsyncadd (%p1027_p7), [#allocation3], 4294967168  ;;  %s946_s16 = sand.u32 1, %s742_s10   ;;  %p1028_p4 = scmp.ne.s32.totalorder %s1018_s19, 0 }
  0x58   : > { %s461_s8 = sshll.u32 %s946_s16, 6  ;;  %s175_s27 = scalar_lea.sflag [#allocation6], %s946_s16 }
  0x59   : > { %s178_s22 = scalar_lea.vmem [#allocation5], %s461_s8 }
  0x5a   : > { %729 = dma.done.wait (%p1028_p4), %s175_s27, 1024  }
  0x5b   : > { %731 = vsyncadd (%p1028_p4), %s175_s27, 4294966272  ;;  %v764_v0 = vmov 0.0   ;;  %vm765_vm0 = vmmov 0   ;;  %v597_v1 = vld [vmem:[%s178_s22] sm:$0xff]   ;;  %v598_v2 = vld [vmem:[%s178_s22 + $0x8] sm:$0xff]   ;;  %s462_s17 = sshll.u32 %s946_s16, 3 }
  0x5c   : > { %497 = vmatprep.subr.bf16.mxu0 %v764_v0  ;;  %513 = vmatprep.mubr.msk.bf16.mxu0 %vm765_vm0, %v764_v0  ;;  %v599_v3 = vld [vmem:[%s178_s22 + $0x10] sm:$0xff]   ;;  %v600_v4 = vld [vmem:[%s178_s22 + $0x18] sm:$0xff]   ;;  %v601_v5 = vld [vmem:[%s178_s22 + $0x20] sm:$0xff]   ;;  %s477_s19 = sshll.u32 %s750_s12, 6  ;;  %s198_s21 = scalar_lea.vmem [#allocation7], %s462_s17 }
  0x5d   : > { %498 = vmatpush3.bf16.xpose.msra.mxu0 %v597_v1  ;;  %v602_v6 = vld [vmem:[%s178_s22 + $0x28] sm:$0xff]   ;;  %v603_v7 = vld [vmem:[%s178_s22 + $0x30] sm:$0xff]   ;;  %v604_v8 = vld [vmem:[%s178_s22 + $0x38] sm:$0xff]   ;;  %s354_s6 = sshll.u32 %s198_s21, 4  ;;  %s959_s5 = scalar_lea.hbm %s1011_s2, %s477_s19  ;;  %s961_s6 = int_to_ptr.vmem [resolvable:$true] %s354_s6 }
  0x5e   : > { %499 = vmatprep.subr.bf16.mxu0 %v764_v0  ;;  %v605_v9 = vld [vmem:[#allocation2] sm:$0xff]   ;;  %s339_s15 = scalar_lea.sflag [#allocation4], %s946_s16  ;;  %s672_s29 = scalar_lea.vmem %s961_s6, 128 }
  0x5f   : > { %p673_p13 = scmp.ne.s32.totalorder %s961_s6, %s672_s29  ;;  %s766_s12 = smov [#allocation7]  }
  0x60   : > { %s676_s30 = sshll.u32 %s766_s12, 4  ;;  %s677_s30 = int_to_ptr.vmem [resolvable:$false] %s676_s30 }
  0x61   : > { %p674_p6 = pnand %p673_p13, %p883_p11  ;;  %s678_s23 = scalar_lea.vmem %s677_s30, 256 }
  0x62   : > { %p679_p12 = scmp.lt.s32.totalorder %s961_s6, %s677_s30  ;;  %p680_p10 = scmp.lt.s32.totalorder %s678_s23, %s672_s29 }
  0x63   : > { %p675_p8 = pneg %p674_p6 }
  0x64   : > { %p681_p0 = por %p680_p10, %p679_p12 }
  0x65   : > { %500 = vmatpush3.bf16.xpose.msra.mxu0 %v598_v2 }
  0x66   : > { %501 = vmatprep.subr.bf16.mxu0 %v764_v0  ;;  %p682_p5 = pnand %p681_p0, %p675_p8 }
  0x6d   : > { %502 = vmatpush3.bf16.xpose.msra.mxu0 %v599_v3 }
  0x6e   : > { %503 = vmatprep.subr.bf16.mxu0 %v764_v0 }
  0x75   : > { %504 = vmatpush3.bf16.xpose.msra.mxu0 %v600_v4 }
  0x76   : > { %505 = vmatprep.subr.bf16.mxu0 %v764_v0 }
  0x7d   : > { %506 = vmatpush3.bf16.xpose.msra.mxu0 %v601_v5 }
  0x7e   : > { %507 = vmatprep.subr.bf16.mxu0 %v764_v0 }
  0x85   : > { %508 = vmatpush3.bf16.xpose.msra.mxu0 %v602_v6 }
  0x86   : > { %509 = vmatprep.subr.bf16.mxu0 %v764_v0 }
  0x8d   : > { %510 = vmatpush3.bf16.xpose.msra.mxu0 %v603_v7 }
  0x8e   : > { %511 = vmatprep.subr.bf16.mxu0 %v764_v0 }
  0x95   : > { %512 = vmatpush3.bf16.xpose.msra.mxu0 %v604_v8 }
  0x9c   : > { %514 = vmatmul.mubr.bf16.vlgmr.msra.gmra.mrb[0].mxu0 %v605_v9 }
 0x16f   : > { %v309_v10 = vpop.f32.mrb[0].mxu0 }
 0x170   : > { %v472_v11 = vmul.f32 -1.442695, %v309_v10  ;;  %v515_v12 = vpop.f32.mrb[1].mxu0 }
 0x171   : > { %v312_v13 = vpop.f32.mrb[2].mxu0 }
 0x172   : > { %606 = vpow2.f32 %v472_v11  ;;  %v473_v14 = vmul.f32 -1.442695, %v312_v13  ;;  %v516_v15 = vpop.f32.mrb[3].mxu0 }
 0x174   : > { %608 = vpow2.f32 %v473_v14 }
 0x17c   : > { %v607_v16 = vpop.eup %606 }
 0x17d   : > { %v322_v17 = vadd.f32 1.0, %v607_v16 }
 0x17e   : > { %v609_v18 = vpop.eup %608 }
 0x17f   : > { %v323_v19 = vadd.f32 1.0, %v609_v18  ;;  %610 = vrcp.f32 %v322_v17 }
 0x181   : > { %612 = vrcp.f32 %v323_v19 }
 0x189   : > { %v611_v20 = vpop.eup %610 }
 0x18b   : > { %v613_v21 = vpop.eup %612 }
 0x18c   : > { %v486_v22 = vpack.c.bf16 %v613_v21, %v611_v20 }
 0x18e   : > { %487 = vst [vmem:[%s198_s21] sm:$0xff] %v486_v22  }
 0x18f   : > { %685 = shalt.err (!%p682_p5)
}
 0x190   : > { %s686_s3 = scalar_lea.hbm %s959_s5, 128  ;;  %s690_s8 = scalar_lea.hbm %s1011_s2, 384 }
 0x191   : > { %p687_p9 = scmp.ne.s32.totalorder %s959_s5, %s686_s3  ;;  %p691_p3 = scmp.lt.u32.totalorder %s959_s5, %s1011_s2 }
 0x192   : > { %p692_p7 = scmp.lt.u32.totalorder %s690_s8, %s686_s3  ;;  %p694_p13 = scmp.lt.u32.totalorder %s686_s3, %s959_s5 }
 0x193   : > { %p688_p1 = pnand %p687_p9, %p883_p11 }
 0x194   : > { %p693_p4 = por %p692_p7, %p691_p3 }
 0x195   : > { %p689_p2 = pneg %p688_p1 }
 0x196   : > { %p695_p6 = por %p694_p13, %p693_p4 }
 0x198   : > { %p696_p8 = pnand %p695_p6, %p689_p2 }
 0x19a   : > { %699 = shalt.err (!%p696_p8)
}
 0x19b   : > { %s767_s17 = smov 64   ;;  %s768_s19 = smov 192  }
 0x19c   : > { %s769_s21 = smov 4  }
 0x19d   : > { %523 = dma.vmem_to_hbm [thread:$0]  (%p883_p11), %s961_s6, 128, %s959_s5, %s339_s15, %s767_s17, %s768_s19, %s769_s21  }
 0x19e PF: > { %p540_p12 = scmp.ge.s32.totalorder %s758_s14, 2  ;;  %s369_s7 = sand.u32 1, %s738_s9  }
 0x19f   : > { %p1029_p10 = scmp.ne.s32.totalorder %s1019_s20, 0  ;;  %s370_s4 = scalar_lea.sflag [#allocation4], %s369_s7 }
 0x1a1   : > { %p534_p0 = pnand %p540_p12, %p1029_p10 }
 0x1a3   : > { %733 = dma.done.wait (!%p534_p0), %s370_s4, 128  }
 0x1a4   : > { %735 = vsyncadd (!%p534_p0), %s370_s4, 4294967168  ;;  %s19_s14 = sadd.s32 1, %s758_s14   ;;  %s1030_s9 = smov %s742_s10 }
 0x1a5   : > { %p16_p5 = scmp.ge.s32.totalorder %s19_s14, 5   ;;  %s1031_s10 = smov %s746_s11 }
 0x1a6   : > { %s1032_s11 = smov %s892_s28  ;;  %s1033_s12 = smov %s754_s13 }
 0x1a7   : > { %s1034_s13 = smov %s1036_s25  ;;  %18 = sbr.rel (!%p16_p5) target bundleno = 7 (0x7), region = 79 }
 0x1ae   :  { %375 = vsyncpa [#allocation3], 1 }
 0x1af   :  { %377 = vsyncpa [#allocation3 + $0x1], 1 }
 0x1b0   :  { %378 = vsyncpa [#allocation6], 1 }
 0x1b1   :  { %380 = vsyncpa [#allocation6 + $0x1], 1 }
 0x1b2   :  { %381 = vsyncpa [#allocation4], 1 }
 0x1b3   :  { %383 = vsyncpa [#allocation4 + $0x1], 1 }

</bundles_post_ra>
